<compile_context>
chip_gen: v7x
topology: tpu7x:2x2x1
jax: 0.10.0
libtpu: 0.0.40
codegen_flags: <defaults>
</compile_context>

<pallas_src>
import functools

import jax
import jax.numpy as jnp
from jax.experimental import pallas as pl
from jax.experimental.pallas import tpu as pltpu

HIDDEN = 512   # fixed by the module definition (nn.Linear(know_num, 512))
LANE = 128


def _round_up(x, m):
    return ((x + m - 1) // m) * m


def _sigmoid(z):
    # exp -> EUP, approx reciprocal -> EUP; keeps both sigmoids off the VALU.
    return pl.reciprocal(1.0 + jnp.exp(-z), approx=True)


def _mlp_kernel(seed_ref, x_ref, w1_ref, b1_ref, w2_ref, b2_ref, o_ref,
                *, training: bool, use_bf16: bool):
    x = x_ref[...]
    w1 = w1_ref[...]
    w2 = w2_ref[...]
    if use_bf16:
        x = x.astype(jnp.bfloat16)
        w1 = w1.astype(jnp.bfloat16)
        w2 = w2.astype(jnp.bfloat16)

    # layer 1: (TB, K_pad) @ (K_pad, 512) + (1, 512)
    h = jnp.dot(x, w1, preferred_element_type=jnp.float32)
    h = _sigmoid(h + b1_ref[...])

    if training:
        # Dropout(p=0.5): independent mask per batch tile (seed + program_id),
        # keep decided by the sign bit, 1/p=2 scale folded into the select.
        pltpu.prng_seed(seed_ref[0] + pl.program_id(0))
        bits = pltpu.prng_random_bits(h.shape)          # int32
        keep = bits >= 0                                # p(keep) = 0.5
        h = jnp.where(keep, h + h, 0.0)

    if use_bf16:
        h = h.astype(jnp.bfloat16)

    # layer 2: (TB, 512) @ (512, E_pad) + (1, E_pad)
    y = jnp.dot(h, w2, preferred_element_type=jnp.float32)
    o_ref[...] = _sigmoid(y + b2_ref[...])


def user_know_gnn_forward(x, w1, b1, w2, b2, *, training=False, seed=0,
                          use_bf16=False, tile_batch=512):
    """x: (B, know_num) f32. w1: (know_num, 512). w2: (512, exp_num).

    Weights are stored pre-transposed (in_features, out_features) so the
    kernel does plain x @ W + b on the MXU.
    """
    batch, know_num = x.shape
    assert w1.shape == (know_num, HIDDEN)
    exp_num = w2.shape[1]

    # Pad lane dims to 128 (full MXU contraction, unmasked stores) and batch
    # to the tile size (the (8,128) block constraint + clean grid).
    k_pad = _round_up(know_num, LANE)
    e_pad = _round_up(exp_num, LANE)
    tb = min(tile_batch, _round_up(batch, 8))   # f32 tile; halve for v7x/v5e if VMEM-tight
    b_pad = _round_up(batch, tb)

    xp = jnp.pad(x.astype(jnp.float32),
                 ((0, b_pad - batch), (0, k_pad - know_num)))
    w1p = jnp.pad(w1.astype(jnp.float32), ((0, k_pad - know_num), (0, 0)))
    b1p = b1.astype(jnp.float32).reshape(1, HIDDEN)
    w2p = jnp.pad(w2.astype(jnp.float32), ((0, 0), (0, e_pad - exp_num)))
    b2p = jnp.pad(b2.astype(jnp.float32).reshape(1, exp_num),
                  ((0, 0), (0, e_pad - exp_num)))
    seed_arr = jnp.array([seed], dtype=jnp.int32)

    kernel = functools.partial(_mlp_kernel, training=training,
                               use_bf16=use_bf16)

    out = pl.pallas_call(
        kernel,
        out_shape=jax.ShapeDtypeStruct((b_pad, e_pad), jnp.float32),
        grid_spec=pltpu.PrefetchScalarGridSpec(
            num_scalar_prefetch=1,              # seed lives in SMEM
            grid=(b_pad // tb,),
            in_specs=[
                pl.BlockSpec((tb, k_pad), lambda i, s: (i, 0)),     # x tile
                pl.BlockSpec((k_pad, HIDDEN), lambda i, s: (0, 0)),  # w1 resident
                pl.BlockSpec((1, HIDDEN), lambda i, s: (0, 0)),      # b1 resident
                pl.BlockSpec((HIDDEN, e_pad), lambda i, s: (0, 0)),  # w2 resident
                pl.BlockSpec((1, e_pad), lambda i, s: (0, 0)),       # b2 resident
            ],
            out_specs=pl.BlockSpec((tb, e_pad), lambda i, s: (i, 0)),
        ),
        compiler_params=pltpu.CompilerParams(
            dimension_semantics=("parallel",)),  # megacore-shard batch tiles
    )(seed_arr, xp, w1p, b1p, w2p, b2p)

    return out[:batch, :exp_num]


def init_params(key, know_num, exp_num):
    """Deterministic synthetic init mimicking nn.Linear's uniform fan-in init."""
    k1, k2, k3, k4 = jax.random.split(key, 4)
    bound1 = 1.0 / (know_num ** 0.5)
    bound2 = 1.0 / (HIDDEN ** 0.5)
    # stored pre-transposed: (in_features, out_features)
    w1 = jax.random.uniform(k1, (know_num, HIDDEN), jnp.float32, -bound1, bound1)
    b1 = jax.random.uniform(k2, (1, HIDDEN), jnp.float32, -bound1, bound1)
    w2 = jax.random.uniform(k3, (HIDDEN, exp_num), jnp.float32, -bound2, bound2)
    b2 = jax.random.uniform(k4, (1, exp_num), jnp.float32, -bound2, bound2)
    return w1, b1, w2, b2


if __name__ == "__main__":
    # Small shapes consistent with the module: forward math is
    # know_num -> 512 -> exp_num applied row-wise over the batch (user_num).
    batch, know_num, exp_num = 8, 32, 64

    key = jax.random.PRNGKey(0)
    kx, kp = jax.random.split(key)
    x = jax.random.normal(kx, (batch, know_num), jnp.float32)
    w1, b1, w2, b2 = init_params(kp, know_num, exp_num)

    # Eval-mode forward (dropout = identity), matching module.eval() semantics.
    # TODO(synk): training-mode dropout uses the TPU hardware PRNG, so its mask
    # is deterministic per-seed but not bit-identical to torch's RNG stream.
    out = user_know_gnn_forward(x, w1, b1, w2, b2, training=False)
    jax.block_until_ready(out)

    # Pure-JAX reference check (eval mode). Tolerance accounts for the EUP
    # approx-reciprocal in the in-kernel sigmoid (~2^-12 relative).
    ref = jax.nn.sigmoid(jax.nn.sigmoid(x @ w1 + b1) @ w2 + b2)
    assert out.shape == ref.shape, "shape mismatch vs reference"
    assert jnp.allclose(out, ref, atol=2e-3, rtol=2e-3), "mismatch vs reference"

    print("KERNEL_OK")
</pallas_src>

<mosaic_0001>
module attributes {stable_mosaic.version = 11 : i64} {
  func.func @_mlp_kernel(%arg0: i32, %arg1: memref<1xi32, #tpu.memory_space<smem>>, %arg2: memref<8x128xf32, #tpu.memory_space<vmem>>, %arg3: memref<128x512xf32, #tpu.memory_space<vmem>>, %arg4: memref<1x512xf32, #tpu.memory_space<vmem>>, %arg5: memref<512x128xf32, #tpu.memory_space<vmem>>, %arg6: memref<1x128xf32, #tpu.memory_space<vmem>>, %arg7: memref<8x128xf32, #tpu.memory_space<vmem>>) attributes {dimension_semantics = [#tpu.dimension_semantics<parallel>], iteration_bounds = array<i64: 1>, scalar_prefetch = 1 : i64, scratch_operands = 0 : i64, tpu.core_type = #tpu.core_type<tc>, window_params = [{transform_indices = @transform_0, window_bounds = array<i64: 8, 128>}, {pipeline_mode = #tpu.pipeline_mode<synchronous>, transform_indices = @transform_1, window_bounds = array<i64: 128, 512>}, {pipeline_mode = #tpu.pipeline_mode<synchronous>, transform_indices = @transform_2, window_bounds = array<i64: 1, 512>}, {pipeline_mode = #tpu.pipeline_mode<synchronous>, transform_indices = @transform_3, window_bounds = array<i64: 512, 128>}, {pipeline_mode = #tpu.pipeline_mode<synchronous>, transform_indices = @transform_4, window_bounds = array<i64: 1, 128>}, {transform_indices = @transform_5, window_bounds = array<i64: 8, 128>}]} {
    %c0 = arith.constant 0 : index
    %c0_0 = arith.constant 0 : index
    %0 = vector.load %arg2[%c0, %c0_0] : memref<8x128xf32, #tpu.memory_space<vmem>>, vector<8x128xf32>
    %c0_1 = arith.constant 0 : index
    %c0_2 = arith.constant 0 : index
    %1 = vector.load %arg3[%c0_1, %c0_2] : memref<128x512xf32, #tpu.memory_space<vmem>>, vector<128x512xf32>
    %c0_3 = arith.constant 0 : index
    %c0_4 = arith.constant 0 : index
    %2 = vector.load %arg5[%c0_3, %c0_4] : memref<512x128xf32, #tpu.memory_space<vmem>>, vector<512x128xf32>
    %cst = arith.constant dense<0.000000e+00> : vector<8x512xf32>
    %3 = tpu.matmul %0, %1, %cst {dimension_numbers = #tpu.dot_dimension_numbers<[1], [0], [0], [1], [0, 0, 1, 1], [], []>} : vector<8x128xf32>, vector<128x512xf32>, vector<8x512xf32> -> vector<8x512xf32>
    %c0_5 = arith.constant 0 : index
    %c0_6 = arith.constant 0 : index
    %4 = vector.load %arg4[%c0_5, %c0_6] : memref<1x512xf32, #tpu.memory_space<vmem>>, vector<1x512xf32>
    %5 = vector.broadcast %4 : vector<1x512xf32> to vector<8x512xf32>
    %6 = arith.addf %3, %5 : vector<8x512xf32>
    %cst_7 = arith.constant 0.000000e+00 : f32
    %7 = vector.broadcast %cst_7 : f32 to vector<8x512xf32>
    %8 = arith.subf %7, %6 : vector<8x512xf32>
    %9 = math.exp %8 : vector<8x512xf32>
    %cst_8 = arith.constant 1.000000e+00 : f32
    %10 = vector.broadcast %cst_8 : f32 to vector<8x512xf32>
    %11 = arith.addf %10, %9 : vector<8x512xf32>
    %12 = tpu.reciprocal %11 {approx = true} : vector<8x512xf32> -> vector<8x512xf32>
    %cst_9 = arith.constant dense<0.000000e+00> : vector<8x128xf32>
    %13 = tpu.matmul %12, %2, %cst_9 {dimension_numbers = #tpu.dot_dimension_numbers<[1], [0], [0], [1], [0, 0, 1, 1], [], []>} : vector<8x512xf32>, vector<512x128xf32>, vector<8x128xf32> -> vector<8x128xf32>
    %c0_10 = arith.constant 0 : index
    %c0_11 = arith.constant 0 : index
    %14 = vector.load %arg6[%c0_10, %c0_11] : memref<1x128xf32, #tpu.memory_space<vmem>>, vector<1x128xf32>
    %15 = vector.broadcast %14 : vector<1x128xf32> to vector<8x128xf32>
    %16 = arith.addf %13, %15 : vector<8x128xf32>
    %cst_12 = arith.constant 0.000000e+00 : f32
    %17 = vector.broadcast %cst_12 : f32 to vector<8x128xf32>
    %18 = arith.subf %17, %16 : vector<8x128xf32>
    %19 = math.exp %18 : vector<8x128xf32>
    %cst_13 = arith.constant 1.000000e+00 : f32
    %20 = vector.broadcast %cst_13 : f32 to vector<8x128xf32>
    %21 = arith.addf %20, %19 : vector<8x128xf32>
    %22 = tpu.reciprocal %21 {approx = true} : vector<8x128xf32> -> vector<8x128xf32>
    %c0_14 = arith.constant 0 : index
    %c0_15 = arith.constant 0 : index
    %23 = vector.load %arg7[%c0_14, %c0_15] : memref<8x128xf32, #tpu.memory_space<vmem>>, vector<8x128xf32>
    tpu.vector_store %arg7[%c0_14, %c0_15], %22 {strides = array<i32>} : memref<8x128xf32, #tpu.memory_space<vmem>>, vector<8x128xf32>,
    return
  }
  func.func @transform_0(%arg0: i32, %arg1: memref<1xi32, #tpu.memory_space<smem>>) -> (i32, i32) {
    %c0_i32 = arith.constant 0 : i32
    %c0_i32_0 = arith.constant 0 : i32
    return %arg0, %c0_i32 : i32, i32
  }
  func.func @transform_1(%arg0: i32, %arg1: memref<1xi32, #tpu.memory_space<smem>>) -> (i32, i32) {
    %c0_i32 = arith.constant 0 : i32
    %c0_i32_0 = arith.constant 0 : i32
    %c0_i32_1 = arith.constant 0 : i32
    return %c0_i32, %c0_i32_0 : i32, i32
  }
  func.func @transform_2(%arg0: i32, %arg1: memref<1xi32, #tpu.memory_space<smem>>) -> (i32, i32) {
    %c0_i32 = arith.constant 0 : i32
    %c0_i32_0 = arith.constant 0 : i32
    %c0_i32_1 = arith.constant 0 : i32
    return %c0_i32, %c0_i32_0 : i32, i32
  }
  func.func @transform_3(%arg0: i32, %arg1: memref<1xi32, #tpu.memory_space<smem>>) -> (i32, i32) {
    %c0_i32 = arith.constant 0 : i32
    %c0_i32_0 = arith.constant 0 : i32
    %c0_i32_1 = arith.constant 0 : i32
    return %c0_i32, %c0_i32_0 : i32, i32
  }
  func.func @transform_4(%arg0: i32, %arg1: memref<1xi32, #tpu.memory_space<smem>>) -> (i32, i32) {
    %c0_i32 = arith.constant 0 : i32
    %c0_i32_0 = arith.constant 0 : i32
    %c0_i32_1 = arith.constant 0 : i32
    return %c0_i32, %c0_i32_0 : i32, i32
  }
  func.func @transform_5(%arg0: i32, %arg1: memref<1xi32, #tpu.memory_space<smem>>) -> (i32, i32) {
    %c0_i32 = arith.constant 0 : i32
    %c0_i32_0 = arith.constant 0 : i32
    return %arg0, %c0_i32 : i32, i32
  }
}

</mosaic_0001>

<bundles_post_ra>
// kernel: tpu_custom_call.1
= control target key start
LH: loop header
LB: loop body
LE: loop exit
PB: predicated region body
PF: predicated region fallthrough
CT: control target
= control target key end

     0   :  { %12 = vsyncpa [#allocation5], 0  ;;  %s964_s0 = inlined_call_operand.<no memory space> [shape: s32[1], index: 0, kind: input, shape index: {}]   ;;  %s965_s1 = inlined_call_operand.hbm [shape: f32[8,128], index: 1, kind: input, shape index: {}]   ;;  %s966_s2 = inlined_call_operand.hbm [shape: f32[128,512], index: 2, kind: input, shape index: {}]   ;;  %s967_s3 = inlined_call_operand.vmem [shape: f32[1,512], index: 3, kind: input, shape index: {}]   ;;  %s968_s4 = inlined_call_operand.hbm [shape: f32[512,128], index: 4, kind: input, shape index: {}]   ;;  %s969_s5 = inlined_call_operand.vmem [shape: f32[1,128], index: 5, kind: input, shape index: {}]   ;;  %s970_s6 = inlined_call_operand.hbm [shape: f32[8,128], index: 6, kind: output, shape index: {}]  }
   0x1   :  { %13 = vsyncpa [#allocation8], 0 }
   0x2   :  { %14 = vsyncpa [#allocation6], 0  ;;  %s866_s0 = smov [#allocation7]   ;;  %s772_s24 = scalar_lea.hbm %s966_s2, 8192 }
   0x3   :  { %s30_s21 = sshll.u32 %s866_s0, 4  ;;  %p773_p0 = scmp.ne.s32.totalorder %s966_s2, %s772_s24  ;;  %s31_s21 = int_to_ptr.vmem [resolvable:$true] %s30_s21 }
   0x4   :  { %p776_p1 = scmp.lt.u32.totalorder %s772_s24, %s966_s2 }
   0x6   :  { %p778_p2 = pnand %p776_p1, %p773_p0 }
   0x8   :  { %781 = shalt.err (!%p778_p2)
}
   0x9   :  { %s782_s29 = scalar_lea.vmem %s31_s21, 8192  ;;  %p787_p4 = scmp.lt.s32.totalorder %s31_s21, %s31_s21 }
   0xa   :  { %p783_p3 = scmp.ne.s32.totalorder %s31_s21, %s782_s29  ;;  %p788_p5 = scmp.lt.s32.totalorder %s782_s29, %s782_s29 }
   0xc   :  { %p789_p6 = por %p788_p5, %p787_p4 }
   0xe   :  { %p790_p7 = pnand %p789_p6, %p783_p3 }
  0x10   :  { %793 = shalt.err (!%p790_p7)
}
  0x11   :  { %s867_s30 = smov 512   ;;  %s868_s7 = smov 32  }
  0x12   :  { %36 = dma.hbm_to_vmem [thread:$0]  %s966_s2, 8192, %s31_s21, [#allocation8], %s867_s30, %s867_s30, %s868_s7  }
  0x13   :  { %s869_s10 = smov [#allocation4]   ;;  %s870_s12 = smov [#allocation9]  }
  0x14   :  { %s21_s11 = sshll.u32 %s869_s10, 4  ;;  %s44_s13 = sshll.u32 %s870_s12, 4  ;;  %s22_s11 = int_to_ptr.vmem [resolvable:$true] %s21_s11  ;;  %s45_s13 = int_to_ptr.vmem [resolvable:$true] %s44_s13 }
  0x15   :  { %s794_s16 = scalar_lea.hbm %s965_s1, 128 }
  0x16   :  { %p795_p8 = scmp.ne.s32.totalorder %s965_s1, %s794_s16  ;;  %p798_p9 = scmp.lt.u32.totalorder %s794_s16, %s965_s1 }
  0x18   :  { %p800_p10 = pnand %p798_p9, %p795_p8 }
  0x1a   :  { %803 = shalt.err (!%p800_p10)
}
  0x1b   :  { %s804_s2 = scalar_lea.vmem %s22_s11, 128  ;;  %p809_p12 = scmp.lt.s32.totalorder %s22_s11, %s22_s11 }
  0x1c   :  { %p805_p11 = scmp.ne.s32.totalorder %s22_s11, %s804_s2  ;;  %p810_p13 = scmp.lt.s32.totalorder %s804_s2, %s804_s2 }
  0x1e   :  { %p811_p0 = por %p810_p13, %p809_p12 }
  0x20   :  { %p812_p1 = pnand %p811_p0, %p805_p11 }
  0x22   :  { %815 = shalt.err (!%p812_p1)
}
  0x23   :  { %24 = dma.hbm_to_vmem [thread:$0]  %s965_s1, 128, %s22_s11, [#allocation5]  }
  0x24   :  { %s816_s24 = scalar_lea.hbm %s968_s4, 8192 }
  0x25   :  { %p817_p2 = scmp.ne.s32.totalorder %s968_s4, %s816_s24  ;;  %p820_p3 = scmp.lt.u32.totalorder %s816_s24, %s968_s4 }
  0x27   :  { %p822_p4 = pnand %p820_p3, %p817_p2 }
  0x29   :  { %825 = shalt.err (!%p822_p4)
}
  0x2a   :  { %s826_s29 = scalar_lea.vmem %s45_s13, 8192  ;;  %p831_p6 = scmp.lt.s32.totalorder %s45_s13, %s45_s13 }
  0x2b   :  { %p827_p5 = scmp.ne.s32.totalorder %s45_s13, %s826_s29  ;;  %p832_p7 = scmp.lt.s32.totalorder %s826_s29, %s826_s29 }
  0x2d   :  { %p833_p8 = por %p832_p7, %p831_p6 }
  0x2f   :  { %p834_p9 = pnand %p833_p8, %p827_p5 }
  0x31   :  { %837 = shalt.err (!%p834_p9)
}
  0x32   :  { %s871_s1 = smov 128   ;;  %s872_s30 = smov 8  }
  0x33   :  { %50 = dma.hbm_to_vmem [thread:$0]  %s968_s4, 8192, %s45_s13, [#allocation8], %s871_s1, %s871_s1, %s872_s30  }
  0x34   :  { %860 = dma.done.wait [#allocation5], 128  }
  0x35   :  { %861 = vsyncadd [#allocation5], 4294967168 }
  0x36   :  { %862 = dma.done.wait [#allocation8], 16384  }
  0x37   :  { %863 = vsyncadd [#allocation8], 4294950912  ;;  %v873_v0 = vmov 0.0   ;;  %v64_v1 = vld [vmem:[#allocation7 + $0x8] sm:$0xff]  ;;  %v66_v3 = vld [vmem:[#allocation7 + $0x18] sm:$0xff]  ;;  %s874_s11 = smov [#allocation10]  }
  0x38   :  { %277 = vmatprep.mubr.f32.mxu0 %v873_v0  ;;  %348 = vmatprep.mubr.f32.mxu1 %v873_v0  ;;  %v68_v2 = vld [vmem:[#allocation7 + $0x28] sm:$0xff]  ;;  %v70_v5 = vld [vmem:[#allocation7 + $0x38] sm:$0xff]  ;;  %v63_v6 = vld [vmem:[#allocation7] sm:$0xff]  ;;  %s534_s12 = sshll.u32 %s874_s11, 4  ;;  %s535_s12 = int_to_ptr.vmem [resolvable:$true] %s534_s12 }
  0x39   :  { %v615_v4 = vpack.c.bf16 %v68_v2, %v64_v1  ;;  %v67_v7 = vld [vmem:[#allocation7 + $0x20] sm:$0xff]  ;;  %v647_v8 = vpack.c.bf16 %v70_v5, %v66_v3  ;;  %v65_v10 = vld [vmem:[#allocation7 + $0x10] sm:$0xff]  ;;  %v72_v12 = vld [vmem:[#allocation7 + $0x48] sm:$0xff]  ;;  %s838_s13 = scalar_lea.vmem %s535_s12, 128  ;;  %p843_p11 = scmp.lt.s32.totalorder %s535_s12, %s535_s12 }
  0x3a   :  { %v617_v9 = vpack.c.bf16 %v67_v7, %v63_v6  ;;  %v69_v11 = vld [vmem:[#allocation7 + $0x30] sm:$0xff]  ;;  %v76_v14 = vld [vmem:[#allocation7 + $0x68] sm:$0xff]  ;;  %v74_v15 = vld [vmem:[#allocation7 + $0x58] sm:$0xff]  ;;  %p839_p10 = scmp.ne.s32.totalorder %s535_s12, %s838_s13  ;;  %p844_p12 = scmp.lt.s32.totalorder %s838_s13, %s838_s13 }
  0x3b   :  { %616 = vmatprep.subr.bf16.mxu0 %v615_v4  ;;  %v649_v13 = vpack.c.bf16 %v69_v11, %v65_v10  ;;  %v78_v16 = vld [vmem:[#allocation7 + $0x78] sm:$0xff]  ;;  %648 = vmatprep.subr.bf16.mxu1 %v647_v8  ;;  %v619_v17 = vpack.c.bf16 %v76_v14, %v72_v12  ;;  %v71_v19 = vld [vmem:[#allocation7 + $0x40] sm:$0xff]  ;;  %v73_v21 = vld [vmem:[#allocation7 + $0x50] sm:$0xff] }
  0x3c   :  { %618 = vmatpush1.bf16.msra.mxu0 %v617_v9  ;;  %v651_v18 = vpack.c.bf16 %v78_v16, %v74_v15  ;;  %v75_v20 = vld [vmem:[#allocation7 + $0x60] sm:$0xff]  ;;  %v77_v23 = vld [vmem:[#allocation7 + $0x70] sm:$0xff]  ;;  %v80_v24 = vld [vmem:[#allocation7 + $0x88] sm:$0xff]  ;;  %p845_p13 = por %p844_p12, %p843_p11 }
  0x3d   :  { %650 = vmatpush1.bf16.msra.mxu1 %v649_v13  ;;  %v621_v22 = vpack.c.bf16 %v75_v20, %v71_v19  ;;  %v84_v25 = vld [vmem:[#allocation7 + $0xa8] sm:$0xff]  ;;  %620 = vmatprep.subr.bf16.mxu0 %v619_v17  ;;  %v653_v26 = vpack.c.bf16 %v77_v23, %v73_v21  ;;  %v82_v28 = vld [vmem:[#allocation7 + $0x98] sm:$0xff]  ;;  %v79_v30 = vld [vmem:[#allocation7 + $0x80] sm:$0xff] }
  0x3e   :  { %652 = vmatprep.subr.bf16.mxu1 %v651_v18  ;;  %v623_v27 = vpack.c.bf16 %v84_v25, %v80_v24  ;;  %v86_v29 = vld [vmem:[#allocation7 + $0xb8] sm:$0xff]  ;;  %v83_v32 = vld [vmem:[#allocation7 + $0xa0] sm:$0xff]  ;;  %v81_v33 = vld [vmem:[#allocation7 + $0x90] sm:$0xff]  ;;  %p846_p0 = pnand %p845_p13, %p839_p10 }
  0x3f   :  { %v655_v31 = vpack.c.bf16 %v86_v29, %v82_v28  ;;  %v85_v34 = vld [vmem:[#allocation7 + $0xb0] sm:$0xff]  ;;  %v625_v35 = vpack.c.bf16 %v83_v32, %v79_v30  ;;  %v88_v36 = vld [vmem:[#allocation7 + $0xc8] sm:$0xff]  ;;  %v90_v38 = vld [vmem:[#allocation7 + $0xd8] sm:$0xff] }
  0x40   :  { %622 = vmatpush1.bf16.msra.mxu0 %v621_v22  ;;  %v92_v37 = vld [vmem:[#allocation7 + $0xe8] sm:$0xff]  ;;  %v657_v39 = vpack.c.bf16 %v85_v34, %v81_v33  ;;  %v94_v41 = vld [vmem:[#allocation7 + $0xf8] sm:$0xff]  ;;  %v87_v42 = vld [vmem:[#allocation7 + $0xc0] sm:$0xff] }
  0x41   :  { %654 = vmatpush1.bf16.msra.mxu1 %v653_v26  ;;  %624 = vmatprep.subr.bf16.mxu0 %v623_v27  ;;  %v627_v40 = vpack.c.bf16 %v92_v37, %v88_v36  ;;  %v91_v43 = vld [vmem:[#allocation7 + $0xe0] sm:$0xff]  ;;  %v659_v44 = vpack.c.bf16 %v94_v41, %v90_v38  ;;  %v89_v45 = vld [vmem:[#allocation7 + $0xd0] sm:$0xff]  ;;  %v96_v47 = vld [vmem:[#allocation7 + $0x108] sm:$0xff] }
  0x42   :  { %656 = vmatprep.subr.bf16.mxu1 %v655_v31  ;;  %v93_v46 = vld [vmem:[#allocation7 + $0xf0] sm:$0xff]  ;;  %v100_v48 = vld [vmem:[#allocation7 + $0x128] sm:$0xff]  ;;  %v98_v49 = vld [vmem:[#allocation7 + $0x118] sm:$0xff]  ;;  %v629_v51 = vpack.c.bf16 %v91_v43, %v87_v42 }
  0x43   :  { %v102_v50 = vld [vmem:[#allocation7 + $0x138] sm:$0xff]  ;;  %v661_v52 = vpack.c.bf16 %v93_v46, %v89_v45  ;;  %v631_v53 = vpack.c.bf16 %v100_v48, %v96_v47  ;;  %v95_v54 = vld [vmem:[#allocation7 + $0x100] sm:$0xff]  ;;  %v97_v56 = vld [vmem:[#allocation7 + $0x110] sm:$0xff] }
  0x44   :  { %626 = vmatpush1.bf16.msra.mxu0 %v625_v35  ;;  %v99_v55 = vld [vmem:[#allocation7 + $0x120] sm:$0xff]  ;;  %v663_v57 = vpack.c.bf16 %v102_v50, %v98_v49  ;;  %v101_v58 = vld [vmem:[#allocation7 + $0x130] sm:$0xff]  ;;  %v104_v59 = vld [vmem:[#allocation7 + $0x148] sm:$0xff] }
  0x45   :  { %658 = vmatpush1.bf16.msra.mxu1 %v657_v39  ;;  %628 = vmatprep.subr.bf16.mxu0 %v627_v40  ;;  %v108_v60 = vld [vmem:[#allocation7 + $0x168] sm:$0xff]  ;;  %v106_v61 = vld [vmem:[#allocation7 + $0x158] sm:$0xff]  ;;  %v633_v63 = vpack.c.bf16 %v99_v55, %v95_v54  ;;  %v665_v0 = vpack.c.bf16 %v101_v58, %v97_v56  ;;  %v103_v2 = vld [vmem:[#allocation7 + $0x140] sm:$0xff] }
  0x46   :  { %660 = vmatprep.subr.bf16.mxu1 %v659_v44  ;;  %v110_v62 = vld [vmem:[#allocation7 + $0x178] sm:$0xff]  ;;  %v635_v1 = vpack.c.bf16 %v108_v60, %v104_v59  ;;  %v107_v3 = vld [vmem:[#allocation7 + $0x160] sm:$0xff]  ;;  %v105_v4 = vld [vmem:[#allocation7 + $0x150] sm:$0xff] }
  0x47   :  { %v667_v5 = vpack.c.bf16 %v110_v62, %v106_v61  ;;  %v109_v6 = vld [vmem:[#allocation7 + $0x170] sm:$0xff]  ;;  %v112_v7 = vld [vmem:[#allocation7 + $0x188] sm:$0xff]  ;;  %v114_v9 = vld [vmem:[#allocation7 + $0x198] sm:$0xff]  ;;  %v637_v11 = vpack.c.bf16 %v107_v3, %v103_v2 }
  0x48   :  { %630 = vmatpush1.bf16.msra.mxu0 %v629_v51  ;;  %v116_v8 = vld [vmem:[#allocation7 + $0x1a8] sm:$0xff]  ;;  %v118_v10 = vld [vmem:[#allocation7 + $0x1b8] sm:$0xff]  ;;  %v669_v12 = vpack.c.bf16 %v109_v6, %v105_v4  ;;  %v111_v14 = vld [vmem:[#allocation7 + $0x180] sm:$0xff] }
  0x49   :  { %662 = vmatpush1.bf16.msra.mxu1 %v661_v52  ;;  %632 = vmatprep.subr.bf16.mxu0 %v631_v53  ;;  %v639_v13 = vpack.c.bf16 %v116_v8, %v112_v7  ;;  %v115_v15 = vld [vmem:[#allocation7 + $0x1a0] sm:$0xff]  ;;  %v113_v16 = vld [vmem:[#allocation7 + $0x190] sm:$0xff]  ;;  %v671_v17 = vpack.c.bf16 %v118_v10, %v114_v9  ;;  %v120_v19 = vld [vmem:[#allocation7 + $0x1c8] sm:$0xff] }
  0x4a   :  { %664 = vmatprep.subr.bf16.mxu1 %v663_v57  ;;  %v117_v18 = vld [vmem:[#allocation7 + $0x1b0] sm:$0xff]  ;;  %v124_v20 = vld [vmem:[#allocation7 + $0x1e8] sm:$0xff]  ;;  %v122_v21 = vld [vmem:[#allocation7 + $0x1d8] sm:$0xff]  ;;  %v641_v23 = vpack.c.bf16 %v115_v15, %v111_v14 }
  0x4b   :  { %v126_v22 = vld [vmem:[#allocation7 + $0x1f8] sm:$0xff]  ;;  %v673_v24 = vpack.c.bf16 %v117_v18, %v113_v16  ;;  %v643_v25 = vpack.c.bf16 %v124_v20, %v120_v19  ;;  %v119_v26 = vld [vmem:[#allocation7 + $0x1c0] sm:$0xff]  ;;  %v121_v29 = vld [vmem:[#allocation7 + $0x1d0] sm:$0xff] }
  0x4c   :  { %634 = vmatpush1.bf16.msra.mxu0 %v633_v63  ;;  %v123_v27 = vld [vmem:[#allocation7 + $0x1e0] sm:$0xff]  ;;  %v675_v28 = vpack.c.bf16 %v126_v22, %v122_v21  ;;  %v125_v30 = vld [vmem:[#allocation7 + $0x1f0] sm:$0xff]  ;;  %v62_v33 = vld [vmem:[#allocation4] sm:$0xff] }
  0x4d   :  { %666 = vmatpush1.bf16.msra.mxu1 %v665_v0  ;;  %636 = vmatprep.subr.bf16.mxu0 %v635_v1  ;;  %v645_v31 = vpack.c.bf16 %v123_v27, %v119_v26  ;;  %v677_v32 = vpack.c.bf16 %v125_v30, %v121_v29  ;;  %v143_v34 = vld [vmem:[#allocation9 + $0x80] sm:$0xff]  ;;  %v144_v35 = vld [vmem:[#allocation9 + $0x88] sm:$0xff]  ;;  %v145_v46 = vld [vmem:[#allocation9 + $0x90] sm:$0xff] }
  0x4e   :  { %668 = vmatprep.subr.bf16.mxu1 %v667_v5  ;;  %v175_v36 = vld [vmem:[#allocation9 + $0x180] sm:$0xff]  ;;  %v679_v37 = vpack.c.bf16 %v144_v35, %v143_v34  ;;  %v176_v38 = vld [vmem:[#allocation9 + $0x188] sm:$0xff]  ;;  %v146_v47 = vld [vmem:[#allocation9 + $0x98] sm:$0xff] }
  0x4f   :  { %v127_v39 = vld [vmem:[#allocation9] sm:$0xff]  ;;  %v128_v40 = vld [vmem:[#allocation9 + $0x8] sm:$0xff]  ;;  %v711_v41 = vpack.c.bf16 %v176_v38, %v175_v36  ;;  %v177_v48 = vld [vmem:[#allocation9 + $0x190] sm:$0xff]  ;;  %v683_v49 = vpack.c.bf16 %v146_v47, %v145_v46 }
  0x50   :  { %638 = vmatpush1.bf16.msra.mxu0 %v637_v11  ;;  %v681_v42 = vpack.c.bf16 %v128_v40, %v127_v39  ;;  %v159_v43 = vld [vmem:[#allocation9 + $0x100] sm:$0xff]  ;;  %v160_v44 = vld [vmem:[#allocation9 + $0x108] sm:$0xff]  ;;  %v178_v50 = vld [vmem:[#allocation9 + $0x198] sm:$0xff] }
  0x51   :  { %670 = vmatpush1.bf16.msra.mxu1 %v669_v12  ;;  %640 = vmatprep.subr.bf16.mxu0 %v639_v13  ;;  %v713_v45 = vpack.c.bf16 %v160_v44, %v159_v43  ;;  %v129_v51 = vld [vmem:[#allocation9 + $0x10] sm:$0xff]  ;;  %v130_v52 = vld [vmem:[#allocation9 + $0x18] sm:$0xff]  ;;  %v715_v53 = vpack.c.bf16 %v178_v50, %v177_v48  ;;  %v147_v58 = vld [vmem:[#allocation9 + $0xa0] sm:$0xff] }
  0x52   :  { %672 = vmatprep.subr.bf16.mxu1 %v671_v17  ;;  %v685_v54 = vpack.c.bf16 %v130_v52, %v129_v51  ;;  %v161_v55 = vld [vmem:[#allocation9 + $0x110] sm:$0xff]  ;;  %v162_v56 = vld [vmem:[#allocation9 + $0x118] sm:$0xff]  ;;  %v148_v59 = vld [vmem:[#allocation9 + $0xa8] sm:$0xff] }
  0x53   :  { %v717_v57 = vpack.c.bf16 %v162_v56, %v161_v55  ;;  %v179_v60 = vld [vmem:[#allocation9 + $0x1a0] sm:$0xff]  ;;  %v687_v61 = vpack.c.bf16 %v148_v59, %v147_v58  ;;  %v180_v62 = vld [vmem:[#allocation9 + $0x1a8] sm:$0xff]  ;;  %v149_v6 = vld [vmem:[#allocation9 + $0xb0] sm:$0xff] }
  0x54   :  { %642 = vmatpush1.bf16.msra.mxu0 %v641_v23  ;;  %v131_v63 = vld [vmem:[#allocation9 + $0x20] sm:$0xff]  ;;  %v132_v0 = vld [vmem:[#allocation9 + $0x28] sm:$0xff]  ;;  %v719_v1 = vpack.c.bf16 %v180_v62, %v179_v60  ;;  %v150_v7 = vld [vmem:[#allocation9 + $0xb8] sm:$0xff] }
  0x55   :  { %674 = vmatpush1.bf16.msra.mxu1 %v673_v24  ;;  %644 = vmatprep.subr.bf16.mxu0 %v643_v25  ;;  %v689_v2 = vpack.c.bf16 %v132_v0, %v131_v63  ;;  %v163_v3 = vld [vmem:[#allocation9 + $0x120] sm:$0xff]  ;;  %v164_v4 = vld [vmem:[#allocation9 + $0x128] sm:$0xff]  ;;  %v181_v8 = vld [vmem:[#allocation9 + $0x1b0] sm:$0xff]  ;;  %v691_v9 = vpack.c.bf16 %v150_v7, %v149_v6 }
  0x56   :  { %676 = vmatprep.subr.bf16.mxu1 %v675_v28  ;;  %v721_v5 = vpack.c.bf16 %v164_v4, %v163_v3  ;;  %v182_v10 = vld [vmem:[#allocation9 + $0x1b8] sm:$0xff]  ;;  %v133_v11 = vld [vmem:[#allocation9 + $0x30] sm:$0xff]  ;;  %v151_v18 = vld [vmem:[#allocation9 + $0xc0] sm:$0xff] }
  0x57   :  { %v134_v12 = vld [vmem:[#allocation9 + $0x38] sm:$0xff]  ;;  %v723_v13 = vpack.c.bf16 %v182_v10, %v181_v8  ;;  %v165_v15 = vld [vmem:[#allocation9 + $0x130] sm:$0xff]  ;;  %v152_v19 = vld [vmem:[#allocation9 + $0xc8] sm:$0xff] }
  0x58   :  { %646 = vmatpush1.bf16.msra.mxu0 %v645_v31  ;;  %v693_v14 = vpack.c.bf16 %v134_v12, %v133_v11  ;;  %v166_v16 = vld [vmem:[#allocation9 + $0x138] sm:$0xff]  ;;  %v183_v20 = vld [vmem:[#allocation9 + $0x1c0] sm:$0xff]  ;;  %v695_v21 = vpack.c.bf16 %v152_v19, %v151_v18  ;;  %v184_v22 = vld [vmem:[#allocation9 + $0x1c8] sm:$0xff] }
  0x59   :  { %678 = vmatpush1.bf16.msra.mxu1 %v677_v32  ;;  %680 = vmatprep.subr.bf16.mxu0 %v679_v37  ;;  %v725_v17 = vpack.c.bf16 %v166_v16, %v165_v15  ;;  %v135_v23 = vld [vmem:[#allocation9 + $0x40] sm:$0xff]  ;;  %v136_v24 = vld [vmem:[#allocation9 + $0x48] sm:$0xff]  ;;  %v727_v25 = vpack.c.bf16 %v184_v22, %v183_v20  ;;  %v153_v30 = vld [vmem:[#allocation9 + $0xd0] sm:$0xff] }
  0x5a   :  { %712 = vmatprep.subr.bf16.mxu1 %v711_v41  ;;  %v697_v26 = vpack.c.bf16 %v136_v24, %v135_v23  ;;  %v167_v27 = vld [vmem:[#allocation9 + $0x140] sm:$0xff]  ;;  %v168_v28 = vld [vmem:[#allocation9 + $0x148] sm:$0xff]  ;;  %v154_v31 = vld [vmem:[#allocation9 + $0xd8] sm:$0xff] }
  0x5b   :  { %278 = vmatmul.mubr.f32.vlgmr.msra.gmra.mrb[0].mxu0 %v62_v33  ;;  %v729_v29 = vpack.c.bf16 %v168_v28, %v167_v27  ;;  %v185_v32 = vld [vmem:[#allocation9 + $0x1d0] sm:$0xff]  ;;  %v186_v34 = vld [vmem:[#allocation9 + $0x1d8] sm:$0xff]  ;;  %v156_v43 = vld [vmem:[#allocation9 + $0xe8] sm:$0xff] }
  0x5c   :  { %349 = vmatmul.mubr.f32.vlgmr.msra.gmra.mrb[0].mxu1 %v62_v33  ;;  %682 = vmatpush3.bf16.msra.mxu0 %v681_v42  ;;  %v699_v33 = vpack.c.bf16 %v154_v31, %v153_v30  ;;  %v137_v35 = vld [vmem:[#allocation9 + $0x50] sm:$0xff]  ;;  %v138_v36 = vld [vmem:[#allocation9 + $0x58] sm:$0xff]  ;;  %v731_v37 = vpack.c.bf16 %v186_v34, %v185_v32  ;;  %v155_v42 = vld [vmem:[#allocation9 + $0xe0] sm:$0xff] }
  0x5d   :  { %714 = vmatpush3.bf16.msra.mxu1 %v713_v45  ;;  %684 = vmatprep.subr.bf16.mxu0 %v683_v49  ;;  %v701_v38 = vpack.c.bf16 %v138_v36, %v137_v35  ;;  %v169_v39 = vld [vmem:[#allocation9 + $0x150] sm:$0xff]  ;;  %v170_v40 = vld [vmem:[#allocation9 + $0x158] sm:$0xff]  ;;  %v187_v44 = vld [vmem:[#allocation9 + $0x1e0] sm:$0xff]  ;;  %v703_v45 = vpack.c.bf16 %v156_v43, %v155_v42 }
  0x5e   :  { %716 = vmatprep.subr.bf16.mxu1 %v715_v53  ;;  %v733_v41 = vpack.c.bf16 %v170_v40, %v169_v39  ;;  %v188_v46 = vld [vmem:[#allocation9 + $0x1e8] sm:$0xff]  ;;  %v139_v47 = vld [vmem:[#allocation9 + $0x60] sm:$0xff]  ;;  %v157_v53 = vld [vmem:[#allocation9 + $0xf0] sm:$0xff] }
  0x5f   :  { %v140_v48 = vld [vmem:[#allocation9 + $0x68] sm:$0xff]  ;;  %v735_v49 = vpack.c.bf16 %v188_v46, %v187_v44  ;;  %v171_v51 = vld [vmem:[#allocation9 + $0x160] sm:$0xff]  ;;  %v158_v55 = vld [vmem:[#allocation9 + $0xf8] sm:$0xff] }
  0x60   :  { %686 = vmatpush3.bf16.msra.mxu0 %v685_v54  ;;  %v705_v50 = vpack.c.bf16 %v140_v48, %v139_v47  ;;  %v172_v52 = vld [vmem:[#allocation9 + $0x168] sm:$0xff]  ;;  %v189_v56 = vld [vmem:[#allocation9 + $0x1f0] sm:$0xff]  ;;  %v707_v58 = vpack.c.bf16 %v158_v55, %v157_v53  ;;  %v174_v0 = vld [vmem:[#allocation9 + $0x178] sm:$0xff] }
  0x61   :  { %718 = vmatpush3.bf16.msra.mxu1 %v717_v57  ;;  %688 = vmatprep.subr.bf16.mxu0 %v687_v61  ;;  %v737_v54 = vpack.c.bf16 %v172_v52, %v171_v51  ;;  %v190_v57 = vld [vmem:[#allocation9 + $0x1f8] sm:$0xff]  ;;  %v141_v60 = vld [vmem:[#allocation9 + $0x70] sm:$0xff] }
  0x62   :  { %720 = vmatprep.subr.bf16.mxu1 %v719_v1  ;;  %v739_v59 = vpack.c.bf16 %v190_v57, %v189_v56  ;;  %v142_v61 = vld [vmem:[#allocation9 + $0x78] sm:$0xff]  ;;  %v173_v62 = vld [vmem:[#allocation9 + $0x170] sm:$0xff] }
  0x63   :  { %v709_v63 = vpack.c.bf16 %v142_v61, %v141_v60  ;;  %v741_v1 = vpack.c.bf16 %v174_v0, %v173_v62  ;;  %v544_v43 = vld [vmem:[%s969_s5] ss:$0 sm:$0xff] }
  0x64   :  { %690 = vmatpush3.bf16.msra.mxu0 %v689_v2  ;;  %v193_v2 = vlaneseq }
  0x65   :  { %722 = vmatpush3.bf16.msra.mxu1 %v721_v5  ;;  %692 = vmatprep.subr.bf16.mxu0 %v691_v9  ;;  %v191_v5 = vld [vmem:[%s967_s3] sm:$0xf] }
  0x66   :  { %724 = vmatprep.subr.bf16.mxu1 %v723_v13  ;;  %v194_v3 = vshrl.u32 %v193_v2, 7 }
  0x68   :  { %694 = vmatpush3.bf16.msra.mxu0 %v693_v14  ;;  %v195_v4 = vsub.s32 0, %v194_v3  ;;  %v203_v6 = vsub.s32 2, %v194_v3  ;;  %v199_v7 = vsub.s32 1, %v194_v3  ;;  %v207_v8 = vsub.s32 3, %v194_v3 }
  0x69   :  { %726 = vmatpush3.bf16.msra.mxu1 %v725_v17  ;;  %696 = vmatprep.subr.bf16.mxu0 %v695_v21 }
  0x6a   :  { %728 = vmatprep.subr.bf16.mxu1 %v727_v25  ;;  %v196_v9 = vrot.slane %v191_v5, %v195_v4  ;;  %v204_v10 = vrot.slane %v191_v5, %v203_v6  ;;  %v200_v11 = vrot.slane %v191_v5, %v199_v7  ;;  %v208_v12 = vrot.slane %v191_v5, %v207_v8 }
  0x6c   :  { %698 = vmatpush3.bf16.msra.mxu0 %v697_v26 }
  0x6d   :  { %730 = vmatpush3.bf16.msra.mxu1 %v729_v29  ;;  %700 = vmatprep.subr.bf16.mxu0 %v699_v33 }
  0x6e   :  { %732 = vmatprep.subr.bf16.mxu1 %v731_v37 }
  0x70   :  { %702 = vmatpush3.bf16.msra.mxu0 %v701_v38 }
  0x71   :  { %734 = vmatpush3.bf16.msra.mxu1 %v733_v41  ;;  %704 = vmatprep.subr.bf16.mxu0 %v703_v45 }
  0x72   :  { %736 = vmatprep.subr.bf16.mxu1 %v735_v49 }
  0x74   :  { %706 = vmatpush3.bf16.msra.mxu0 %v705_v50 }
  0x75   :  { %738 = vmatpush3.bf16.msra.mxu1 %v737_v54  ;;  %708 = vmatprep.subr.bf16.mxu0 %v707_v58 }
  0x76   :  { %740 = vmatprep.subr.bf16.mxu1 %v739_v59 }
  0x78   :  { %710 = vmatpush3.bf16.msra.mxu0 %v709_v63 }
  0x79   :  { %742 = vmatpush3.bf16.msra.mxu1 %v741_v1 }
 0x12e   :  { %v279_v13 = vpop.f32.mrb[0].mxu0 }
 0x12f   :  { %v280_v14 = vadd.f32 %v279_v13, %v196_v9  ;;  %v350_v15 = vpop.f32.mrb[0].mxu1  ;;  %v281_v16 = vpop.f32.mrb[1].mxu0 }
 0x130   :  { %v351_v17 = vadd.f32 %v350_v15, %v204_v10  ;;  %v282_v18 = vadd.f32 %v281_v16, %v200_v11  ;;  %v352_v19 = vpop.f32.mrb[1].mxu1 }
 0x131   :  { %v355_v20 = vsub.f32 0.0, %v280_v14  ;;  %v353_v21 = vadd.f32 %v352_v19, %v208_v12 }
 0x132   :  { %v357_v22 = vsub.f32 0.0, %v351_v17  ;;  %v356_v23 = vsub.f32 0.0, %v282_v18 }
 0x133   :  { %v359_v24 = vmul.f32 1.442695, %v355_v20  ;;  %v358_v25 = vsub.f32 0.0, %v353_v21 }
 0x134   :  { %v363_v26 = vmul.f32 1.442695, %v357_v22  ;;  %v361_v27 = vmul.f32 1.442695, %v356_v23 }
 0x135   :  { %752 = vpow2.f32 %v359_v24  ;;  %v365_v28 = vmul.f32 1.442695, %v358_v25 }
 0x136   :  { %754 = vpow2.f32 %v363_v26 }
 0x137   :  { %756 = vpow2.f32 %v361_v27 }
 0x138   :  { %758 = vpow2.f32 %v365_v28 }
 0x13f   :  { %v753_v29 = vpop.eup %752 }
 0x140   :  { %v755_v30 = vpop.eup %754  ;;  %v367_v31 = vadd.f32 1.0, %v753_v29 }
 0x141   :  { %v757_v32 = vpop.eup %756  ;;  %v369_v33 = vadd.f32 1.0, %v755_v30 }
 0x142   :  { %v759_v34 = vpop.eup %758  ;;  %760 = vrcp.f32 %v367_v31  ;;  %v368_v35 = vadd.f32 1.0, %v757_v32 }
 0x143   :  { %762 = vrcp.f32 %v369_v33  ;;  %v370_v36 = vadd.f32 1.0, %v759_v34 }
 0x144   :  { %764 = vrcp.f32 %v368_v35 }
 0x145   :  { %766 = vrcp.f32 %v370_v36 }
 0x14c   :  { %v761_v37 = vpop.eup %760 }
 0x14d   :  { %v763_v38 = vpop.eup %762 }
 0x14e   :  { %v765_v39 = vpop.eup %764 }
 0x14f   :  { %v767_v40 = vpop.eup %766  ;;  %446 = vmatprep.mubr.f32.mxu0 %v765_v39 }
 0x150   :  { %516 = vmatprep.mubr.f32.mxu1 %v767_v40  ;;  %447 = vmatmul.mubr.f32.vlgmr.msra.gmra.mrb[2].mxu0 %v761_v37 }
 0x151   :  { %517 = vmatmul.mubr.f32.vlgmr.msra.gmra.mrb[2].mxu1 %v763_v38 }
 0x223   :  { %v577_v41 = vpop.f32.mrb[2].mxu0 }
 0x224   :  { %v612_v42 = vpop.f32.mrb[2].mxu1  ;;  %v578_v44 = vpop.f32.mrb[3].mxu0 }
 0x225   :  { %v579_v45 = vadd.f32 %v578_v44, %v577_v41  ;;  %v613_v46 = vpop.f32.mrb[3].mxu1 }
 0x226   :  { %v614_v47 = vadd.f32 %v613_v46, %v612_v42 }
 0x227   :  { %v449_v48 = vadd.f32 %v579_v45, %v544_v43 }
 0x229   :  { %v519_v49 = vadd.f32 %v614_v47, %v449_v48 }
 0x22b   :  { %v522_v50 = vsub.f32 0.0, %v519_v49 }
 0x22d   :  { %v523_v51 = vmul.f32 1.442695, %v522_v50 }
 0x22f   :  { %768 = vpow2.f32 %v523_v51 }
 0x239   :  { %v769_v52 = vpop.eup %768 }
 0x23a   :  { %v525_v53 = vadd.f32 1.0, %v769_v52 }
 0x23c   :  { %770 = vrcp.f32 %v525_v53 }
 0x246   :  { %v771_v54 = vpop.eup %770 }
 0x247   :  { %527 = vst [vmem:[#allocation10] sm:$0xff] %v771_v54 }
 0x248   :  { %849 = shalt.err (!%p846_p0)
}
 0x249   :  { %s850_s15 = scalar_lea.hbm %s970_s6, 128 }
 0x24a   :  { %p851_p1 = scmp.ne.s32.totalorder %s970_s6, %s850_s15  ;;  %p854_p2 = scmp.lt.u32.totalorder %s850_s15, %s970_s6 }
 0x24c   :  { %p856_p3 = pnand %p854_p2, %p851_p1 }
 0x24e   :  { %859 = shalt.err (!%p856_p3)
}
 0x24f   :  { %537 = dma.vmem_to_hbm [thread:$0]  %s535_s12, 128, %s970_s6, [#allocation6]  }
 0x250   :  { %864 = dma.done.wait [#allocation6], 128  }
 0x251   :  { %865 = vsyncadd [#allocation6], 4294967168 }
 0x252   :  { %541 = vsyncpa [#allocation5], 1 }
 0x253   :  { %542 = vsyncpa [#allocation8], 1 }
 0x254   :  { %543 = vsyncpa [#allocation6], 1 }

</bundles_post_ra>
